<compile_context>
chip_gen: v7x
topology: tpu7x:2x2x1
jax: 0.10.0
libtpu: 0.0.40
codegen_flags: <defaults>
</compile_context>

<pallas_src>
import math
from functools import partial

import jax
import jax.numpy as jnp
import numpy as np
from jax.experimental import pallas as pl
from jax.experimental.pallas import tpu as pltpu

D_MODEL = 20
NUM_HEADS = 1
D_FF = 120
LN_EPS = 1e-5
LANES = 128


def _round8(n):
    return (n + 7) // 8 * 8


# ---- Row layout of the packed parameter buffer ------------------------------
# All matrix blocks start at sublane-aligned (multiple-of-8) row offsets so the
# static ref slices inside the kernel never straddle a tile start.
ROW_WQ = 0                                  # (D, D)   rows   0..19
ROW_WK = ROW_WQ + _round8(D_MODEL)          # (D, D)   rows  24..43
ROW_WV = ROW_WK + _round8(D_MODEL)          # (D, D)   rows  48..67
ROW_WO = ROW_WV + _round8(D_MODEL)          # (D, D)   rows  72..91
ROW_W1 = ROW_WO + _round8(D_MODEL)          # (D, F)   rows  96..115
ROW_W2 = ROW_W1 + _round8(D_MODEL)          # (F, D)   rows 120..239
ROW_VEC = ROW_W2 + _round8(D_FF)            # vectors start at row 240
ROW_BQ, ROW_BK, ROW_BV, ROW_BO = ROW_VEC + 0, ROW_VEC + 1, ROW_VEC + 2, ROW_VEC + 3
ROW_B1, ROW_B2 = ROW_VEC + 4, ROW_VEC + 5
ROW_G1, ROW_BE1, ROW_G2, ROW_BE2 = ROW_VEC + 6, ROW_VEC + 7, ROW_VEC + 8, ROW_VEC + 9
N_ROWS = _round8(ROW_VEC + 10)              # 256 rows total -> (256, 128) f32 = 128 KiB


def pack_params(p):
    """Pack all weights (pre-transposed to (in, out)), biases and LayerNorm params
    into one lane-padded (N_ROWS, 128) fp32 buffer. Done once, cached by the caller."""
    buf = np.zeros((N_ROWS, LANES), np.float32)

    def put_w(row, w):                      # w: PyTorch-style (out, in) -> store (in, out)
        wt = np.asarray(w, np.float32).T
        buf[row:row + wt.shape[0], :wt.shape[1]] = wt

    def put_v(row, v):
        v = np.asarray(v, np.float32).reshape(-1)
        buf[row, :v.shape[0]] = v

    put_w(ROW_WQ, p["wq"]); put_w(ROW_WK, p["wk"]); put_w(ROW_WV, p["wv"])
    put_w(ROW_WO, p["wo"]); put_w(ROW_W1, p["w1"]); put_w(ROW_W2, p["w2"])
    put_v(ROW_BQ, p["bq"]); put_v(ROW_BK, p["bk"]); put_v(ROW_BV, p["bv"])
    put_v(ROW_BO, p["bo"]); put_v(ROW_B1, p["b1"]); put_v(ROW_B2, p["b2"])
    put_v(ROW_G1, p["g1"]); put_v(ROW_BE1, p["be1"])
    put_v(ROW_G2, p["g2"]); put_v(ROW_BE2, p["be2"])
    return jnp.asarray(buf)


def _layernorm(x, gamma, beta):
    # x: (N, D), gamma/beta: (1, D). Biased variance, matching nn.LayerNorm.
    mean = jnp.mean(x, axis=-1, keepdims=True)
    var = jnp.mean((x - mean) ** 2, axis=-1, keepdims=True)
    return (x - mean) * jax.lax.rsqrt(var + LN_EPS) * gamma + beta


def encoder_layer_kernel(x_ref, mask_ref, p_ref, out_ref):
    Bt, S, D = x_ref.shape
    F = D_FF

    # Static, sublane-aligned views into the single packed parameter buffer.
    wq = p_ref[ROW_WQ:ROW_WQ + D, :D]
    wk = p_ref[ROW_WK:ROW_WK + D, :D]
    wv = p_ref[ROW_WV:ROW_WV + D, :D]
    wo = p_ref[ROW_WO:ROW_WO + D, :D]
    w1 = p_ref[ROW_W1:ROW_W1 + D, :F]
    w2 = p_ref[ROW_W2:ROW_W2 + F, :D]
    bq = p_ref[ROW_BQ:ROW_BQ + 1, :D]
    bk = p_ref[ROW_BK:ROW_BK + 1, :D]
    bv = p_ref[ROW_BV:ROW_BV + 1, :D]
    bo = p_ref[ROW_BO:ROW_BO + 1, :D]
    b1 = p_ref[ROW_B1:ROW_B1 + 1, :F]
    b2 = p_ref[ROW_B2:ROW_B2 + 1, :D]
    g1 = p_ref[ROW_G1:ROW_G1 + 1, :D]
    be1 = p_ref[ROW_BE1:ROW_BE1 + 1, :D]
    g2 = p_ref[ROW_G2:ROW_G2 + 1, :D]
    be2 = p_ref[ROW_BE2:ROW_BE2 + 1, :D]

    x3 = x_ref[...]                         # (Bt, S, D)
    x = x3.reshape(Bt * S, D)               # flatten batch*seq for the projections

    # --- Q/K/V projections: three tiny MXU pushes, no lane-unaligned splits ---
    q = (jnp.dot(x, wq, preferred_element_type=jnp.float32) + bq).reshape(Bt, S, D)
    k = (jnp.dot(x, wk, preferred_element_type=jnp.float32) + bk).reshape(Bt, S, D)
    v = (jnp.dot(x, wv, preferred_element_type=jnp.float32) + bv).reshape(Bt, S, D)

    # --- Scaled dot-product attention (num_heads == 1 -> single head, d_k = D) ---
    scale = 1.0 / math.sqrt(D // NUM_HEADS)
    scores = jnp.einsum("bqd,bkd->bqk", q, k,
                        preferred_element_type=jnp.float32) * scale
    # masked_fill(mask == 0, -1e9), mask broadcast over the batch dim (same per head).
    mask = mask_ref[...]                    # (S, S)
    scores = jnp.where(mask[None, :, :] == 0.0, jnp.float32(-1e9), scores)

    m = jnp.max(scores, axis=-1, keepdims=True)
    e = jnp.exp(scores - m)
    denom = jnp.sum(e, axis=-1, keepdims=True)
    probs = e * pl.reciprocal(denom, approx=True)

    attn = jnp.einsum("bqk,bkd->bqd", probs, v,
                      preferred_element_type=jnp.float32).reshape(Bt * S, D)
    attn_out = jnp.dot(attn, wo, preferred_element_type=jnp.float32) + bo

    # residual + LayerNorm 1 (dropout is identity in eval mode)
    h = _layernorm(x + attn_out, g1, be1)

    # --- Position-wise feed forward ---
    ff = jnp.maximum(
        jnp.dot(h, w1, preferred_element_type=jnp.float32) + b1, 0.0)
    ff = jnp.dot(ff, w2, preferred_element_type=jnp.float32) + b2

    # residual + LayerNorm 2
    out_ref[...] = _layernorm(h + ff, g2, be2).reshape(Bt, S, D)


@partial(jax.jit, static_argnames=("block_b",))
def encoder_layer(x, mask, packed_params, block_b=None):
    """x: (B, S, D) fp32, mask: (S, S) (0 -> masked), packed_params: (N_ROWS, 128)."""
    B, S, D = x.shape
    assert D == D_MODEL
    if block_b is None:
        block_b = B                         # collapse the grid: one step for whole batch
    assert B % block_b == 0
    nb = B // block_b

    mask2d = mask.astype(jnp.float32)

    return pl.pallas_call(
        encoder_layer_kernel,
        out_shape=jax.ShapeDtypeStruct((B, S, D), jnp.float32),
        grid=(nb,),
        in_specs=[
            pl.BlockSpec((block_b, S, D), lambda b: (b, 0, 0)),      # activations
            pl.BlockSpec((S, S), lambda b: (0, 0)),                  # shared (S,S) mask
            pl.BlockSpec((N_ROWS, LANES), lambda b: (0, 0)),         # packed params
        ],
        out_specs=pl.BlockSpec((block_b, S, D), lambda b: (b, 0, 0)),
        compiler_params=pltpu.CompilerParams(
            dimension_semantics=("parallel",)),
    )(x, mask2d, packed_params)


def encoder_layer_reference(x, mask, p):
    """Pure-JAX reference mirroring the PyTorch forward (dropout in eval mode)."""
    def lin(h, w, b):
        return h @ w.T + b[0]

    def ln(h, g, be):
        mu = jnp.mean(h, axis=-1, keepdims=True)
        var = jnp.mean((h - mu) ** 2, axis=-1, keepdims=True)
        return (h - mu) / jnp.sqrt(var + LN_EPS) * g[0] + be[0]

    q = lin(x, p["wq"], p["bq"])
    k = lin(x, p["wk"], p["bk"])
    v = lin(x, p["wv"], p["bv"])
    scores = jnp.einsum("bqd,bkd->bqk", q, k) / math.sqrt(D_MODEL // NUM_HEADS)
    scores = jnp.where(mask == 0, -1e9, scores)
    probs = jax.nn.softmax(scores, axis=-1)
    attn = jnp.einsum("bqk,bkd->bqd", probs, v)
    attn_out = lin(attn, p["wo"], p["bo"])
    h = ln(x + attn_out, p["g1"], p["be1"])
    ff = lin(jax.nn.relu(lin(h, p["w1"], p["b1"])), p["w2"], p["b2"])
    return ln(h + ff, p["g2"], p["be2"])


def make_params(key):
    """Deterministic synthetic parameters with PyTorch nn.Linear shapes."""
    keys = jax.random.split(key, 12)

    def linear(kw, kb, out_f, in_f):
        bound = 1.0 / math.sqrt(in_f)
        w = jax.random.uniform(kw, (out_f, in_f), jnp.float32, -bound, bound)
        b = jax.random.uniform(kb, (1, out_f), jnp.float32, -bound, bound)
        return w, b

    p = {}
    p["wq"], p["bq"] = linear(keys[0], keys[1], D_MODEL, D_MODEL)
    p["wk"], p["bk"] = linear(keys[2], keys[3], D_MODEL, D_MODEL)
    p["wv"], p["bv"] = linear(keys[4], keys[5], D_MODEL, D_MODEL)
    p["wo"], p["bo"] = linear(keys[6], keys[7], D_MODEL, D_MODEL)
    p["w1"], p["b1"] = linear(keys[8], keys[9], D_FF, D_MODEL)
    p["w2"], p["b2"] = linear(keys[10], keys[11], D_MODEL, D_FF)
    # LayerNorm affine params (gamma=1, beta=0, like fresh nn.LayerNorm)
    p["g1"] = jnp.ones((1, D_MODEL), jnp.float32)
    p["be1"] = jnp.zeros((1, D_MODEL), jnp.float32)
    p["g2"] = jnp.ones((1, D_MODEL), jnp.float32)
    p["be2"] = jnp.zeros((1, D_MODEL), jnp.float32)
    return p


if __name__ == "__main__":
    B, S = 2, 8
    root = jax.random.PRNGKey(0)
    kx, kp = jax.random.split(root)

    x = jax.random.normal(kx, (B, S, D_MODEL), jnp.float32)
    # Causal mask (0 -> masked), shared across batch and heads (num_heads == 1).
    mask = jnp.tril(jnp.ones((S, S), jnp.float32))
    params = make_params(kp)

    # Pack all parameters once (hoisted out of the per-call path).
    packed = pack_params(params)

    out = encoder_layer(x, mask, packed)
    out = jax.block_until_ready(out)

    ref = encoder_layer_reference(x, mask, params)
    np.testing.assert_allclose(np.asarray(out), np.asarray(ref),
                               rtol=5e-3, atol=5e-3)
    print("KERNEL_OK")
</pallas_src>

<mosaic_0001>
module attributes {stable_mosaic.version = 11 : i64} {
  func.func @encoder_layer_kernel(%arg0: i32, %arg1: memref<2x8x20xf32, #tpu.memory_space<vmem>>, %arg2: memref<8x8xf32, #tpu.memory_space<vmem>>, %arg3: memref<256x128xf32, #tpu.memory_space<vmem>>, %arg4: memref<2x8x20xf32, #tpu.memory_space<vmem>>) attributes {dimension_semantics = [#tpu.dimension_semantics<parallel>], iteration_bounds = array<i64: 1>, scalar_prefetch = 0 : i64, scratch_operands = 0 : i64, tpu.core_type = #tpu.core_type<tc>, window_params = [{transform_indices = @transform_0, window_bounds = array<i64: 2, 8, 20>}, {pipeline_mode = #tpu.pipeline_mode<synchronous>, transform_indices = @transform_1, window_bounds = array<i64: 8, 8>}, {pipeline_mode = #tpu.pipeline_mode<synchronous>, transform_indices = @transform_2, window_bounds = array<i64: 256, 128>}, {transform_indices = @transform_3, window_bounds = array<i64: 2, 8, 20>}]} {
    %c0 = arith.constant 0 : index
    %c0_0 = arith.constant 0 : index
    %0 = vector.load %arg3[%c0, %c0_0] : memref<256x128xf32, #tpu.memory_space<vmem>>, vector<20x20xf32>
    %c24 = arith.constant 24 : index
    %c0_1 = arith.constant 0 : index
    %1 = vector.load %arg3[%c24, %c0_1] : memref<256x128xf32, #tpu.memory_space<vmem>>, vector<20x20xf32>
    %c48 = arith.constant 48 : index
    %c0_2 = arith.constant 0 : index
    %2 = vector.load %arg3[%c48, %c0_2] : memref<256x128xf32, #tpu.memory_space<vmem>>, vector<20x20xf32>
    %c72 = arith.constant 72 : index
    %c0_3 = arith.constant 0 : index
    %3 = vector.load %arg3[%c72, %c0_3] : memref<256x128xf32, #tpu.memory_space<vmem>>, vector<20x20xf32>
    %c96 = arith.constant 96 : index
    %c0_4 = arith.constant 0 : index
    %4 = vector.load %arg3[%c96, %c0_4] : memref<256x128xf32, #tpu.memory_space<vmem>>, vector<20x120xf32>
    %c120 = arith.constant 120 : index
    %c0_5 = arith.constant 0 : index
    %5 = vector.load %arg3[%c120, %c0_5] : memref<256x128xf32, #tpu.memory_space<vmem>>, vector<120x20xf32>
    %c240 = arith.constant 240 : index
    %c0_6 = arith.constant 0 : index
    %6 = vector.load %arg3[%c240, %c0_6] : memref<256x128xf32, #tpu.memory_space<vmem>>, vector<1x20xf32>
    %c241 = arith.constant 241 : index
    %c0_7 = arith.constant 0 : index
    %7 = vector.load %arg3[%c241, %c0_7] : memref<256x128xf32, #tpu.memory_space<vmem>>, vector<1x20xf32>
    %c242 = arith.constant 242 : index
    %c0_8 = arith.constant 0 : index
    %8 = vector.load %arg3[%c242, %c0_8] : memref<256x128xf32, #tpu.memory_space<vmem>>, vector<1x20xf32>
    %c243 = arith.constant 243 : index
    %c0_9 = arith.constant 0 : index
    %9 = vector.load %arg3[%c243, %c0_9] : memref<256x128xf32, #tpu.memory_space<vmem>>, vector<1x20xf32>
    %c244 = arith.constant 244 : index
    %c0_10 = arith.constant 0 : index
    %10 = vector.load %arg3[%c244, %c0_10] : memref<256x128xf32, #tpu.memory_space<vmem>>, vector<1x120xf32>
    %c245 = arith.constant 245 : index
    %c0_11 = arith.constant 0 : index
    %11 = vector.load %arg3[%c245, %c0_11] : memref<256x128xf32, #tpu.memory_space<vmem>>, vector<1x20xf32>
    %c246 = arith.constant 246 : index
    %c0_12 = arith.constant 0 : index
    %12 = vector.load %arg3[%c246, %c0_12] : memref<256x128xf32, #tpu.memory_space<vmem>>, vector<1x20xf32>
    %c247 = arith.constant 247 : index
    %c0_13 = arith.constant 0 : index
    %13 = vector.load %arg3[%c247, %c0_13] : memref<256x128xf32, #tpu.memory_space<vmem>>, vector<1x20xf32>
    %c248 = arith.constant 248 : index
    %c0_14 = arith.constant 0 : index
    %14 = vector.load %arg3[%c248, %c0_14] : memref<256x128xf32, #tpu.memory_space<vmem>>, vector<1x20xf32>
    %c249 = arith.constant 249 : index
    %c0_15 = arith.constant 0 : index
    %15 = vector.load %arg3[%c249, %c0_15] : memref<256x128xf32, #tpu.memory_space<vmem>>, vector<1x20xf32>
    %c0_16 = arith.constant 0 : index
    %c0_17 = arith.constant 0 : index
    %c0_18 = arith.constant 0 : index
    %16 = vector.load %arg1[%c0_16, %c0_17, %c0_18] : memref<2x8x20xf32, #tpu.memory_space<vmem>>, vector<2x8x20xf32>
    %17 = vector.shape_cast %16 : vector<2x8x20xf32> to vector<16x20xf32>
    %cst = arith.constant dense<0.000000e+00> : vector<16x20xf32>
    %18 = tpu.matmul %17, %0, %cst {dimension_numbers = #tpu.dot_dimension_numbers<[1], [0], [0], [1], [0, 0, 1, 1], [], []>} : vector<16x20xf32>, vector<20x20xf32>, vector<16x20xf32> -> vector<16x20xf32>
    %19 = vector.broadcast %6 : vector<1x20xf32> to vector<16x20xf32>
    %20 = arith.addf %18, %19 : vector<16x20xf32>
    %21 = vector.shape_cast %20 : vector<16x20xf32> to vector<2x8x20xf32>
    %cst_19 = arith.constant dense<0.000000e+00> : vector<16x20xf32>
    %22 = tpu.matmul %17, %1, %cst_19 {dimension_numbers = #tpu.dot_dimension_numbers<[1], [0], [0], [1], [0, 0, 1, 1], [], []>} : vector<16x20xf32>, vector<20x20xf32>, vector<16x20xf32> -> vector<16x20xf32>
    %23 = vector.broadcast %7 : vector<1x20xf32> to vector<16x20xf32>
    %24 = arith.addf %22, %23 : vector<16x20xf32>
    %25 = vector.shape_cast %24 : vector<16x20xf32> to vector<2x8x20xf32>
    %cst_20 = arith.constant dense<0.000000e+00> : vector<16x20xf32>
    %26 = tpu.matmul %17, %2, %cst_20 {dimension_numbers = #tpu.dot_dimension_numbers<[1], [0], [0], [1], [0, 0, 1, 1], [], []>} : vector<16x20xf32>, vector<20x20xf32>, vector<16x20xf32> -> vector<16x20xf32>
    %27 = vector.broadcast %8 : vector<1x20xf32> to vector<16x20xf32>
    %28 = arith.addf %26, %27 : vector<16x20xf32>
    %29 = vector.shape_cast %28 : vector<16x20xf32> to vector<2x8x20xf32>
    "tpu.trace_start"() <{level = 10 : i32, message = "bqd,bkd->bqk"}> : () -> ()
    %cst_21 = arith.constant dense<0.000000e+00> : vector<2x8x8xf32>
    %30 = tpu.matmul %21, %25, %cst_21 {dimension_numbers = #tpu.dot_dimension_numbers<[2], [2], [1], [1], [0, 0, 0, 1, 1, 1], [0], [0]>} : vector<2x8x20xf32>, vector<2x8x20xf32>, vector<2x8x8xf32> -> vector<2x8x8xf32>
    "tpu.trace_stop"() : () -> ()
    %cst_22 = arith.constant 0.223606795 : f32
    %31 = vector.broadcast %cst_22 : f32 to vector<2x8x8xf32>
    %32 = arith.mulf %30, %31 : vector<2x8x8xf32>
    %c0_23 = arith.constant 0 : index
    %c0_24 = arith.constant 0 : index
    %33 = vector.load %arg2[%c0_23, %c0_24] : memref<8x8xf32, #tpu.memory_space<vmem>>, vector<8x8xf32>
    %34 = vector.shape_cast %33 : vector<8x8xf32> to vector<1x8x8xf32>
    %cst_25 = arith.constant 0.000000e+00 : f32
    %35 = vector.broadcast %cst_25 : f32 to vector<1x8x8xf32>
    %36 = arith.cmpf oeq, %34, %35 : vector<1x8x8xf32>
    %cst_26 = arith.constant -1.000000e+09 : f32
    %37 = vector.shape_cast %36 : vector<1x8x8xi1> to vector<1x8x8xi1>
    %38 = vector.broadcast %37 : vector<1x8x8xi1> to vector<2x8x8xi1>
    %39 = vector.broadcast %cst_26 : f32 to vector<2x8x8xf32>
    %40 = arith.select %38, %39, %32 : vector<2x8x8xi1>, vector<2x8x8xf32>
    %cst_27 = arith.constant dense<0xFF800000> : vector<2x8xf32>
    %41 = vector.multi_reduction <maximumf>, %40, %cst_27 [2] : vector<2x8x8xf32> to vector<2x8xf32>
    %42 = vector.shape_cast %41 : vector<2x8xf32> to vector<2x8x1xf32>
    %43 = vector.broadcast %42 : vector<2x8x1xf32> to vector<2x8x8xf32>
    %44 = arith.subf %40, %43 : vector<2x8x8xf32>
    %45 = math.exp %44 : vector<2x8x8xf32>
    %cst_28 = arith.constant dense<0.000000e+00> : vector<2x8xf32>
    %46 = vector.multi_reduction <add>, %45, %cst_28 [2] : vector<2x8x8xf32> to vector<2x8xf32>
    %47 = vector.shape_cast %46 : vector<2x8xf32> to vector<2x8x1xf32>
    %48 = tpu.reciprocal %47 {approx = true} : vector<2x8x1xf32> -> vector<2x8x1xf32>
    %49 = vector.broadcast %48 : vector<2x8x1xf32> to vector<2x8x8xf32>
    %50 = arith.mulf %45, %49 : vector<2x8x8xf32>
    "tpu.trace_start"() <{level = 10 : i32, message = "bqk,bkd->bqd"}> : () -> ()
    %cst_29 = arith.constant dense<0.000000e+00> : vector<2x8x20xf32>
    %51 = tpu.matmul %50, %29, %cst_29 {dimension_numbers = #tpu.dot_dimension_numbers<[2], [1], [1], [2], [0, 0, 0, 1, 1, 2], [0], [0]>} : vector<2x8x8xf32>, vector<2x8x20xf32>, vector<2x8x20xf32> -> vector<2x8x20xf32>
    "tpu.trace_stop"() : () -> ()
    %52 = vector.shape_cast %51 : vector<2x8x20xf32> to vector<16x20xf32>
    %cst_30 = arith.constant dense<0.000000e+00> : vector<16x20xf32>
    %53 = tpu.matmul %52, %3, %cst_30 {dimension_numbers = #tpu.dot_dimension_numbers<[1], [0], [0], [1], [0, 0, 1, 1], [], []>} : vector<16x20xf32>, vector<20x20xf32>, vector<16x20xf32> -> vector<16x20xf32>
    %54 = vector.broadcast %9 : vector<1x20xf32> to vector<16x20xf32>
    %55 = arith.addf %53, %54 : vector<16x20xf32>
    %56 = arith.addf %17, %55 : vector<16x20xf32>
    %cst_31 = arith.constant dense<0.000000e+00> : vector<16xf32>
    %57 = vector.multi_reduction <add>, %56, %cst_31 [1] : vector<16x20xf32> to vector<16xf32>
    %58 = vector.shape_cast %57 : vector<16xf32> to vector<16x1xf32>
    %cst_32 = arith.constant 2.000000e+01 : f32
    %59 = vector.broadcast %cst_32 : f32 to vector<16x1xf32>
    %60 = arith.divf %58, %59 : vector<16x1xf32>
    %61 = vector.broadcast %60 : vector<16x1xf32> to vector<16x20xf32>
    %62 = arith.subf %56, %61 : vector<16x20xf32>
    %63 = arith.mulf %62, %62 : vector<16x20xf32>
    %cst_33 = arith.constant dense<0.000000e+00> : vector<16xf32>
    %64 = vector.multi_reduction <add>, %63, %cst_33 [1] : vector<16x20xf32> to vector<16xf32>
    %65 = vector.shape_cast %64 : vector<16xf32> to vector<16x1xf32>
    %cst_34 = arith.constant 2.000000e+01 : f32
    %66 = vector.broadcast %cst_34 : f32 to vector<16x1xf32>
    %67 = arith.divf %65, %66 : vector<16x1xf32>
    %68 = vector.broadcast %60 : vector<16x1xf32> to vector<16x20xf32>
    %69 = arith.subf %56, %68 : vector<16x20xf32>
    %cst_35 = arith.constant 9.99999974E-6 : f32
    %70 = vector.broadcast %cst_35 : f32 to vector<16x1xf32>
    %71 = arith.addf %67, %70 : vector<16x1xf32>
    %72 = math.rsqrt %71 : vector<16x1xf32>
    %73 = vector.broadcast %72 : vector<16x1xf32> to vector<16x20xf32>
    %74 = arith.mulf %69, %73 : vector<16x20xf32>
    %75 = vector.broadcast %12 : vector<1x20xf32> to vector<16x20xf32>
    %76 = arith.mulf %74, %75 : vector<16x20xf32>
    %77 = vector.broadcast %13 : vector<1x20xf32> to vector<16x20xf32>
    %78 = arith.addf %76, %77 : vector<16x20xf32>
    %cst_36 = arith.constant dense<0.000000e+00> : vector<16x120xf32>
    %79 = tpu.matmul %78, %4, %cst_36 {dimension_numbers = #tpu.dot_dimension_numbers<[1], [0], [0], [1], [0, 0, 1, 1], [], []>} : vector<16x20xf32>, vector<20x120xf32>, vector<16x120xf32> -> vector<16x120xf32>
    %80 = vector.broadcast %10 : vector<1x120xf32> to vector<16x120xf32>
    %81 = arith.addf %79, %80 : vector<16x120xf32>
    %cst_37 = arith.constant 0.000000e+00 : f32
    %82 = vector.broadcast %cst_37 : f32 to vector<16x120xf32>
    %83 = arith.maximumf %81, %82 : vector<16x120xf32>
    %cst_38 = arith.constant dense<0.000000e+00> : vector<16x20xf32>
    %84 = tpu.matmul %83, %5, %cst_38 {dimension_numbers = #tpu.dot_dimension_numbers<[1], [0], [0], [1], [0, 0, 1, 1], [], []>} : vector<16x120xf32>, vector<120x20xf32>, vector<16x20xf32> -> vector<16x20xf32>
    %85 = vector.broadcast %11 : vector<1x20xf32> to vector<16x20xf32>
    %86 = arith.addf %84, %85 : vector<16x20xf32>
    %87 = arith.addf %78, %86 : vector<16x20xf32>
    %cst_39 = arith.constant dense<0.000000e+00> : vector<16xf32>
    %88 = vector.multi_reduction <add>, %87, %cst_39 [1] : vector<16x20xf32> to vector<16xf32>
    %89 = vector.shape_cast %88 : vector<16xf32> to vector<16x1xf32>
    %cst_40 = arith.constant 2.000000e+01 : f32
    %90 = vector.broadcast %cst_40 : f32 to vector<16x1xf32>
    %91 = arith.divf %89, %90 : vector<16x1xf32>
    %92 = vector.broadcast %91 : vector<16x1xf32> to vector<16x20xf32>
    %93 = arith.subf %87, %92 : vector<16x20xf32>
    %94 = arith.mulf %93, %93 : vector<16x20xf32>
    %cst_41 = arith.constant dense<0.000000e+00> : vector<16xf32>
    %95 = vector.multi_reduction <add>, %94, %cst_41 [1] : vector<16x20xf32> to vector<16xf32>
    %96 = vector.shape_cast %95 : vector<16xf32> to vector<16x1xf32>
    %cst_42 = arith.constant 2.000000e+01 : f32
    %97 = vector.broadcast %cst_42 : f32 to vector<16x1xf32>
    %98 = arith.divf %96, %97 : vector<16x1xf32>
    %99 = vector.broadcast %91 : vector<16x1xf32> to vector<16x20xf32>
    %100 = arith.subf %87, %99 : vector<16x20xf32>
    %cst_43 = arith.constant 9.99999974E-6 : f32
    %101 = vector.broadcast %cst_43 : f32 to vector<16x1xf32>
    %102 = arith.addf %98, %101 : vector<16x1xf32>
    %103 = math.rsqrt %102 : vector<16x1xf32>
    %104 = vector.broadcast %103 : vector<16x1xf32> to vector<16x20xf32>
    %105 = arith.mulf %100, %104 : vector<16x20xf32>
    %106 = vector.broadcast %14 : vector<1x20xf32> to vector<16x20xf32>
    %107 = arith.mulf %105, %106 : vector<16x20xf32>
    %108 = vector.broadcast %15 : vector<1x20xf32> to vector<16x20xf32>
    %109 = arith.addf %107, %108 : vector<16x20xf32>
    %110 = vector.shape_cast %109 : vector<16x20xf32> to vector<2x8x20xf32>
    %c0_44 = arith.constant 0 : index
    %c0_45 = arith.constant 0 : index
    %c0_46 = arith.constant 0 : index
    %111 = vector.load %arg4[%c0_44, %c0_45, %c0_46] : memref<2x8x20xf32, #tpu.memory_space<vmem>>, vector<2x8x20xf32>
    tpu.vector_store %arg4[%c0_44, %c0_45, %c0_46], %110 {strides = array<i32>} : memref<2x8x20xf32, #tpu.memory_space<vmem>>, vector<2x8x20xf32>,
    return
  }
  func.func @transform_0(%arg0: i32) -> (i32, i32, i32) {
    %c0_i32 = arith.constant 0 : i32
    %c0_i32_0 = arith.constant 0 : i32
    %c0_i32_1 = arith.constant 0 : i32
    return %arg0, %c0_i32, %c0_i32_0 : i32, i32, i32
  }
  func.func @transform_1(%arg0: i32) -> (i32, i32) {
    %c0_i32 = arith.constant 0 : i32
    %c0_i32_0 = arith.constant 0 : i32
    %c0_i32_1 = arith.constant 0 : i32
    return %c0_i32, %c0_i32_0 : i32, i32
  }
  func.func @transform_2(%arg0: i32) -> (i32, i32) {
    %c0_i32 = arith.constant 0 : i32
    %c0_i32_0 = arith.constant 0 : i32
    %c0_i32_1 = arith.constant 0 : i32
    return %c0_i32, %c0_i32_0 : i32, i32
  }
  func.func @transform_3(%arg0: i32) -> (i32, i32, i32) {
    %c0_i32 = arith.constant 0 : i32
    %c0_i32_0 = arith.constant 0 : i32
    %c0_i32_1 = arith.constant 0 : i32
    return %arg0, %c0_i32, %c0_i32_0 : i32, i32, i32
  }
}

</mosaic_0001>

<bundles_post_ra>
// kernel: encoder_layer.1
= control target key start
LH: loop header
LB: loop body
LE: loop exit
PB: predicated region body
PF: predicated region fallthrough
CT: control target
= control target key end

     0   :  { %8 = vsyncpa [#allocation3], 0  ;;  %s1539_s0 = inlined_call_operand.hbm [shape: f32[2,8,20], index: 0, kind: input, shape index: {}]   ;;  %s1540_s1 = inlined_call_operand.hbm [shape: f32[8,8], index: 1, kind: input, shape index: {}]   ;;  %s1541_s2 = inlined_call_operand.hbm [shape: f32[256,128], index: 2, kind: input, shape index: {}]   ;;  %s1542_s3 = inlined_call_operand.hbm [shape: f32[2,8,20], index: 3, kind: output, shape index: {}]  }
   0x1   :  { %9 = vsyncpa [#allocation6], 0 }
   0x2   :  { %10 = vsyncpa [#allocation4], 0  ;;  %s1391_s12 = smov [#allocation5]   ;;  %s1392_s14 = smov [#allocation2]  }
   0x3   :  { %s29_s13 = sshll.u32 %s1391_s12, 4  ;;  %s16_s15 = sshll.u32 %s1392_s14, 4  ;;  %s30_s13 = int_to_ptr.vmem [resolvable:$true] %s29_s13  ;;  %s1419_s15 = int_to_ptr.vmem [resolvable:$true] %s16_s15 }
   0x4   :  { %s1297_s18 = scalar_lea.hbm %s1540_s1, 128 }
   0x5   :  { %p1298_p0 = scmp.ne.s32.totalorder %s1540_s1, %s1297_s18  ;;  %p1301_p1 = scmp.lt.u32.totalorder %s1297_s18, %s1540_s1 }
   0x7   :  { %p1303_p2 = pnand %p1301_p1, %p1298_p0 }
   0x9   :  { %1306 = shalt.err (!%p1303_p2)
}
   0xa   :  { %s1307_s23 = scalar_lea.vmem %s30_s13, 128  ;;  %p1312_p4 = scmp.lt.s32.totalorder %s30_s13, %s30_s13 }
   0xb   :  { %p1308_p3 = scmp.ne.s32.totalorder %s30_s13, %s1307_s23  ;;  %p1313_p5 = scmp.lt.s32.totalorder %s1307_s23, %s1307_s23 }
   0xd   :  { %p1314_p6 = por %p1313_p5, %p1312_p4 }
   0xf   :  { %p1315_p7 = pnand %p1314_p6, %p1308_p3 }
  0x11   :  { %1318 = shalt.err (!%p1315_p7)
}
  0x12   :  { %32 = dma.hbm_to_vmem [thread:$0]  %s1540_s1, 128, %s30_s13, [#allocation6]  }
  0x13   :  { %s1319_s28 = scalar_lea.hbm %s1539_s0, 256 }
  0x14   :  { %p1320_p8 = scmp.ne.s32.totalorder %s1539_s0, %s1319_s28  ;;  %p1323_p9 = scmp.lt.u32.totalorder %s1319_s28, %s1539_s0 }
  0x16   :  { %p1325_p10 = pnand %p1323_p9, %p1320_p8 }
  0x18   :  { %1328 = shalt.err (!%p1325_p10)
}
  0x19   :  { %s1329_s6 = scalar_lea.vmem %s1419_s15, 256  ;;  %p1334_p12 = scmp.lt.s32.totalorder %s1419_s15, %s1419_s15 }
  0x1a   :  { %p1330_p11 = scmp.ne.s32.totalorder %s1419_s15, %s1329_s6  ;;  %p1335_p13 = scmp.lt.s32.totalorder %s1329_s6, %s1329_s6 }
  0x1c   :  { %p1336_p0 = por %p1335_p13, %p1334_p12 }
  0x1e   :  { %p1337_p1 = pnand %p1336_p0, %p1330_p11 }
  0x20   :  { %1340 = shalt.err (!%p1337_p1)
}
  0x21   :  { %s1393_s1 = smov 128   ;;  %s1394_s7 = smov 8  }
  0x22   :  { %22 = dma.hbm_to_vmem [thread:$0]  %s1539_s0, 256, %s1419_s15, [#allocation3], %s1393_s1, %s1393_s1, %s1394_s7  }
  0x23   :  { %s1395_s10 = smov [#allocation7]   ;;  %s1341_s14 = scalar_lea.hbm %s1541_s2, 4096 }
  0x24   :  { %s38_s11 = sshll.u32 %s1395_s10, 4  ;;  %p1342_p2 = scmp.ne.s32.totalorder %s1541_s2, %s1341_s14  ;;  %s39_s11 = int_to_ptr.vmem [resolvable:$true] %s38_s11 }
  0x25   :  { %p1345_p3 = scmp.lt.u32.totalorder %s1341_s14, %s1541_s2 }
  0x27   :  { %p1347_p4 = pnand %p1345_p3, %p1342_p2 }
  0x29   :  { %1350 = shalt.err (!%p1347_p4)
}
  0x2a   :  { %s1351_s20 = scalar_lea.vmem %s39_s11, 4096  ;;  %p1356_p6 = scmp.lt.s32.totalorder %s39_s11, %s39_s11 }
  0x2b   :  { %p1352_p5 = scmp.ne.s32.totalorder %s39_s11, %s1351_s20  ;;  %p1357_p7 = scmp.lt.s32.totalorder %s1351_s20, %s1351_s20 }
  0x2d   :  { %p1358_p8 = por %p1357_p7, %p1356_p6 }
  0x2f   :  { %p1359_p9 = pnand %p1358_p8, %p1352_p5 }
  0x31   :  { %1362 = shalt.err (!%p1359_p9)
}
  0x32   :  { %44 = dma.hbm_to_vmem [thread:$0]  %s1541_s2, 4096, %s39_s11, [#allocation6], %s1393_s1, %s1393_s1, %s1394_s7  }
  0x33   :  { %1385 = dma.done.wait [#allocation3], 256  }
  0x34   :  { %1386 = vsyncadd [#allocation3], 4294967040 }
  0x35   :  { %1387 = dma.done.wait [#allocation6], 4224  }
  0x36   :  { %1388 = vsyncadd [#allocation6], 4294963072  ;;  %vm100_vm0 = vcmask 162816   ;;  %v54_v0 = vld [vmem:[#allocation7] sm:$0xff]  ;;  %v55_v1 = vld [vmem:[#allocation7 + $0x8] sm:$0xff]  ;;  %vm107_vm1 = vcmask 1043456  }
  0x37   :  { %v1225_v2 = vpack.c.bf16 %v55_v1, %v54_v0  ;;  %v1468_v3 = vld [vmem:[#allocation2] sm:$0xff]  ;;  %v56_v4 = vld [vmem:[#allocation7 + $0x10] sm:$0xf]  ;;  %v57_v5 = vld [vmem:[#allocation7 + $0x18] sm:$0xff]  ;;  %v1396_v14 = vmov 0.0   ;;  %vm1397_vm2 = vmmov 0  }
  0x38   :  { %1133 = vmatprep.mubr.msk.f32.mxu1 %vm100_vm0, %v1468_v3  ;;  %v58_v6 = vld [vmem:[#allocation7 + $0x20] sm:$0xff]  ;;  %v1473_v8 = vld [vmem:[#allocation2 + $0x8] sm:$0xff]  ;;  %v59_v9 = vld [vmem:[#allocation7 + $0x28] sm:$0xf]  ;;  %1164 = vmatprep.subr.mxu0 %v1396_v14  ;;  %vm510_vm4 = vcmask 64512   ;;  %vm902_vm5 = vcmask 982016  }
  0x39   :  { %1226 = vmatprep.subr.bf16.mxu1 %v1225_v2  ;;  %v1229_v7 = vpack.c.bf16 %v58_v6, %v57_v5  ;;  %v60_v10 = vld [vmem:[#allocation7 + $0x30] sm:$0xff]  ;;  %v61_v11 = vld [vmem:[#allocation7 + $0x38] sm:$0xff]  ;;  %v62_v13 = vld [vmem:[#allocation7 + $0x40] sm:$0xf]  ;;  %1166 = vmatprep.mubr.msk.f32.mxu0 %vm1397_vm2, %v1396_v14  ;;  %s1398_s2 = smov [#allocation8]  }
  0x3a   :  { %1228 = vmatpush3.bf16.msra.mxu1 %v1225_v2  ;;  %v1233_v12 = vpack.c.bf16 %v61_v11, %v60_v10  ;;  %v1048_v17 = vld [vmem:[#allocation7 + $0xf1] ss:$0 sm:$0xff]  ;;  %v1044_v20 = vld [vmem:[#allocation7 + $0xf0] ss:$0 sm:$0xff]  ;;  %v1052_v25 = vld [vmem:[#allocation7 + $0xf2] ss:$0 sm:$0xff] }
  0x3b   :  { %1131 = vmatprep.subr.msk.mxu1 %vm107_vm1, %v56_v4  ;;  %v504_v30 = vld [vmem:[#allocation5] sm:$0xff]  ;;  %v63_v51 = vld [vmem:[#allocation7 + $0x48] sm:$0xff]  ;;  %v64_v52 = vld [vmem:[#allocation7 + $0x50] sm:$0xff]  ;;  %s1031_s21 = sshll.u32 %s1398_s2, 4  ;;  %s1032_s21 = int_to_ptr.vmem [resolvable:$true] %s1031_s21 }
  0x3c   :  { %vm505_vm3 = vcmp.eq.f32.partialorder %v504_v30, 0.0  ;;  %v1237_v53 = vpack.c.bf16 %v64_v52, %v63_v51  ;;  %v65_v60 = vld [vmem:[#allocation7 + $0x58] sm:$0xf]  ;;  %v1062_v1 = vld [vmem:[#allocation7 + $0xf3] ss:$0 sm:$0xff]  ;;  %s1363_s22 = scalar_lea.vmem %s1032_s21, 256  ;;  %p1368_p11 = scmp.lt.s32.totalorder %s1032_s21, %s1032_s21 }
  0x3d   :  { %v73_v30 = vld [vmem:[#allocation7 + $0x98] sm:$0xff]  ;;  %p1364_p10 = scmp.ne.s32.totalorder %s1032_s21, %s1363_s22  ;;  %p1369_p12 = scmp.lt.s32.totalorder %s1363_s22, %s1363_s22 }
  0x3e   :  { %1132 = vmatpush3.msk.msra.mxu1 %vm107_vm1, %v56_v4 }
  0x3f   :  { %1134 = vmatmul.mubr.msk.f32.vlgmr.msra.gmra.mrb[0].mxu1 %vm100_vm0, %v1473_v8  ;;  %1230 = vmatprep.subr.bf16.mxu1 %v1229_v7  ;;  %p1370_p13 = por %p1369_p12, %p1368_p11 }
  0x40   :  { %1232 = vmatpush3.bf16.msra.mxu1 %v1229_v7  ;;  %1142 = vmatprep.mubr.msk.f32.mxu1 %vm100_vm0, %v1468_v3 }
  0x41   :  { %1140 = vmatprep.subr.msk.mxu1 %vm107_vm1, %v59_v9  ;;  %p1371_p0 = pnand %p1370_p13, %p1364_p10 }
  0x44   :  { %1141 = vmatpush3.msk.msra.mxu1 %vm107_vm1, %v59_v9 }
  0x45   :  { %1143 = vmatmul.mubr.msk.f32.vlgmr.msra.gmra.mrb[2].mxu1 %vm100_vm0, %v1473_v8  ;;  %1234 = vmatprep.subr.bf16.mxu1 %v1233_v12 }
  0x46   :  { %1236 = vmatpush3.bf16.msra.mxu1 %v1233_v12  ;;  %1151 = vmatprep.mubr.msk.f32.mxu1 %vm100_vm0, %v1468_v3 }
  0x47   :  { %1149 = vmatprep.subr.msk.mxu1 %vm107_vm1, %v62_v13 }
  0x4a   :  { %1150 = vmatpush3.msk.msra.mxu1 %vm107_vm1, %v62_v13 }
  0x4b   :  { %1152 = vmatmul.mubr.msk.f32.vlgmr.msra.gmra.mrb[4].mxu1 %vm100_vm0, %v1473_v8  ;;  %1154 = vmatprep.subr.mxu1 %v1396_v14 }
  0x4c   :  { %1156 = vmatprep.mubr.msk.f32.mxu1 %vm1397_vm2, %v1396_v14 }
 0x112   :  { %v1135_v15 = vpop.f32.mrb[0].mxu1 }
 0x113   :  { %v177_v16 = vpop.f32.mrb[1].mxu1  ;;  %v183_v24 = vadd.f32 %v1135_v15, %v1044_v20 }
 0x114   :  { %v178_v22 = vadd.f32 %v1044_v20, %v177_v16 }
 0x118   :  { %v1144_v18 = vpop.f32.mrb[2].mxu1 }
 0x119   :  { %v259_v19 = vpop.f32.mrb[3].mxu1  ;;  %v265_v23 = vadd.f32 %v1144_v18, %v1048_v17 }
 0x11a   :  { %v260_v21 = vadd.f32 %v1048_v17, %v259_v19 }
 0x11c   :  { %1155 = vmatpush3.xpose.msk.msra.mxu1 %vm100_vm0, %v260_v21  ;;  %v67_v21 = vld [vmem:[#allocation7 + $0x68] sm:$0xff] }
 0x11d   :  { %1159 = vmatprep.subr.mxu1 %v1396_v14 }
 0x11e   :  { %v1153_v26 = vpop.f32.mrb[4].mxu1 }
 0x11f   :  { %1157 = vmatmul.mubr.msk.f32.vlgmr.msra.gmra.mrb[6].mxu1 %vm100_vm0, %v178_v22  ;;  %v347_v27 = vadd.f32 %v1153_v26, %v1052_v25  ;;  %v341_v28 = vpop.f32.mrb[5].mxu1  ;;  %v71_v26 = vld [vmem:[#allocation7 + $0x88] sm:$0xff] }
 0x120   :  { %1160 = vmatpush3.xpose.msk.msra.mxu1 %vm100_vm0, %v265_v23  ;;  %1161 = vmatprep.mubr.msk.f32.mxu1 %vm1397_vm2, %v1396_v14  ;;  %v342_v29 = vadd.f32 %v1052_v25, %v341_v28  ;;  %v68_v23 = vld [vmem:[#allocation7 + $0x70] sm:$0xf]  ;;  %v70_v25 = vld [vmem:[#allocation7 + $0x80] sm:$0xff] }
 0x121   :  { %1169 = vmatprep.subr.mxu1 %v1396_v14  ;;  %v72_v28 = vld [vmem:[#allocation7 + $0x90] sm:$0xff] }
 0x122   :  { %1165 = vmatpush3.msra.mxu0 %v342_v29  ;;  %v1249_v29 = vpack.c.bf16 %v72_v28, %v71_v26 }
 0x123   :  { %1162 = vmatmul.mubr.msk.f32.vlgmr.msra.gmra.mrb[8].mxu1 %vm100_vm0, %v183_v24  ;;  %1238 = vmatprep.subr.bf16.mxu0 %v1237_v53  ;;  %v69_v24 = vld [vmem:[#allocation7 + $0x78] sm:$0xff] }
 0x124   :  { %1171 = vmatprep.mubr.msk.f32.mxu1 %vm1397_vm2, %v1396_v14  ;;  %1170 = vmatpush3.msra.mxu1 %v347_v27  ;;  %v1245_v27 = vpack.c.bf16 %v70_v25, %v69_v24 }
 0x1f2   :  { %v422_v31 = vpop.f32.mrb[6].mxu1 }
 0x1f3   :  { %v502_v32 = vmul.f32 0.2236068, %v422_v31  ;;  %v1158_v33 = vpop.f32.mrb[7].mxu1  ;;  %v74_v31 = vld [vmem:[#allocation7 + $0xa0] sm:$0xff] }
 0x1f4   :  { %v75_v33 = vld [vmem:[#allocation7 + $0xa8] sm:$0xff] }
 0x1f5   :  { %v508_v34 = vsel %vm505_vm3, -1e+09, %v502_v32  ;;  %v1253_v32 = vpack.c.bf16 %v74_v31, %v73_v30  ;;  %v1075_v31 = vld [vmem:[#allocation7 + $0xf8] ss:$0 sm:$0xff] }
 0x1f6   :  { %v498_v35 = vpop.f32.mrb[8].mxu1  ;;  %v511_v36 = vsel %vm510_vm4, %v508_v34, -inf }
 0x1f7   :  { %v503_v37 = vmul.f32 0.2236068, %v498_v35  ;;  %512 = vmax.xlane.f32.xlu0 %v511_v36  ;;  %v1163_v38 = vpop.f32.mrb[9].mxu1  ;;  %v77_v36 = vld [vmem:[#allocation7 + $0xb8] sm:$0xff] }
 0x1f9   :  { %v509_v39 = vsel %vm505_vm3, -1e+09, %v503_v37  ;;  %v78_v37 = vld [vmem:[#allocation7 + $0xc0] sm:$0xff] }
 0x1fa   :  { %v514_v40 = vsel %vm510_vm4, %v509_v39, -inf  ;;  %v1261_v38 = vpack.c.bf16 %v78_v37, %v77_v36 }
 0x1fb   :  { %515 = vmax.xlane.f32.xlu0 %v514_v40  ;;  %v80_v40 = vld [vmem:[#allocation7 + $0xd0] sm:$0xff] }
 0x284   :  { %v513_v41 = vpop.xlane.xlu0 %512 }
 0x285   :  { %v517_v42 = vsub.f32 %v508_v34, %v513_v41  ;;  %v76_v34 = vld [vmem:[#allocation7 + $0xb0] sm:$0xff] }
 0x286   :  { %v1257_v35 = vpack.c.bf16 %v76_v34, %v75_v33 }
 0x287   :  { %v519_v43 = vmul.f32 1.442695, %v517_v42 }
 0x288   :  { %v516_v44 = vpop.xlane.xlu0 %515 }
 0x289   :  { %1281 = vpow2.f32 %v519_v43  ;;  %v518_v45 = vsub.f32 %v509_v39, %v516_v44  ;;  %v79_v39 = vld [vmem:[#allocation7 + $0xc8] sm:$0xff] }
 0x28a   :  { %v1265_v41 = vpack.c.bf16 %v80_v40, %v79_v39 }
 0x28b   :  { %v521_v46 = vmul.f32 1.442695, %v518_v45 }
 0x28d   :  { %1283 = vpow2.f32 %v521_v46 }
 0x293   :  { %v1282_v47 = vpop.eup %1281 }
 0x294   :  { %v523_v48 = vsel %vm510_vm4, %v1282_v47, 0.0 }
 0x295   :  { %524 = vadd.xlane.f32.xlu1 %v523_v48 }
 0x297   :  { %v1284_v49 = vpop.eup %1283 }
 0x298   :  { %v526_v50 = vsel %vm510_vm4, %v1284_v49, 0.0 }
 0x299   :  { %527 = vadd.xlane.f32.xlu1 %v526_v50 }
 0x322   :  { %v525_v54 = vpop.xlane.xlu1 %524 }
 0x323   :  { %1285 = vrcp.f32 %v525_v54 }
 0x326   :  { %v528_v55 = vpop.xlane.xlu1 %527 }
 0x327   :  { %1287 = vrcp.f32 %v528_v55 }
 0x32d   :  { %v1286_v56 = vpop.eup %1285 }
 0x32e   :  { %v531_v57 = vmul.f32 %v1286_v56, %v1282_v47 }
 0x330   :  { %1167 = vmatmul.mubr.msk.f32.vlgmr.msra.gmra.mrb[0].mxu0 %vm510_vm4, %v531_v57 }
 0x331   :  { %v1288_v58 = vpop.eup %1287  ;;  %1240 = vmatpush3.bf16.msra.mxu0 %v1237_v53  ;;  %v1067_v53 = vld [vmem:[#allocation7 + $0xf7] ss:$0 sm:$0xff] }
 0x332   :  { %v532_v59 = vmul.f32 %v1288_v58, %v1284_v49  ;;  %1178 = vmatprep.subr.msk.mxu0 %vm107_vm1, %v65_v60  ;;  %v1066_v49 = vld [vmem:[#allocation7 + $0xf6] ss:$0 sm:$0xff]  ;;  %v81_v58 = vld [vmem:[#allocation7 + $0xd8] sm:$0xff] }
 0x334   :  { %1172 = vmatmul.mubr.msk.f32.vlgmr.msra.gmra.mrb[10].mxu1 %vm510_vm4, %v532_v59  ;;  %v82_v59 = vld [vmem:[#allocation7 + $0xe0] sm:$0xff] }
 0x335   :  { %1179 = vmatpush3.msk.msra.mxu0 %vm107_vm1, %v65_v60  ;;  %v1269_v60 = vpack.c.bf16 %v82_v59, %v81_v58 }
 0x336   :  { %1246 = vmatprep.subr.bf16.mxu0 %v1245_v27 }
 0x403   :  { %v602_v61 = vpop.f32.mrb[0].mxu0 }
 0x404   :  { %v1168_v62 = vpop.f32.mrb[1].mxu0  ;;  %1180 = vmatprep.mubr.msk.f32.mxu0 %vm100_vm0, %v602_v61  ;;  %v83_v61 = vld [vmem:[#allocation7 + $0xe8] sm:$0xff] }
 0x405   :  { %v1068_v62 = vld [vmem:[#allocation7 + $0xf4] ss:$0 sm:$0xff] }
 0x407   :  { %v675_v63 = vpop.f32.mrb[10].mxu1 }
 0x408   :  { %v1173_v0 = vpop.f32.mrb[11].mxu1  ;;  %1181 = vmatmul.mubr.msk.f32.vlgmr.msra.gmra.mrb[2].mxu0 %vm100_vm0, %v675_v63 }
 0x409   :  { %1248 = vmatpush3.bf16.msra.mxu0 %v1245_v27 }
 0x40a   :  { %1250 = vmatprep.subr.bf16.mxu0 %v1249_v29 }
 0x40d   :  { %1252 = vmatpush3.bf16.msra.mxu0 %v1249_v29 }
 0x40e   :  { %1254 = vmatprep.subr.bf16.mxu0 %v1253_v32 }
 0x411   :  { %1256 = vmatpush3.bf16.msra.mxu0 %v1253_v32 }
 0x412   :  { %1258 = vmatprep.subr.bf16.mxu0 %v1257_v35 }
 0x415   :  { %1260 = vmatpush3.bf16.msra.mxu0 %v1257_v35  ;;  %v1076_v35 = vld [vmem:[#allocation7 + $0xf9] ss:$0 sm:$0xff] }
 0x416   :  { %1262 = vmatprep.subr.bf16.mxu0 %v1261_v38 }
 0x419   :  { %1264 = vmatpush3.bf16.msra.mxu0 %v1261_v38 }
 0x41a   :  { %1266 = vmatprep.subr.bf16.mxu0 %v1265_v41 }
 0x41d   :  { %1268 = vmatpush3.bf16.msra.mxu0 %v1265_v41 }
 0x41e   :  { %1270 = vmatprep.subr.bf16.mxu0 %v1269_v60 }
 0x421   :  { %1272 = vmatpush3.bf16.msra.mxu0 %v1269_v60 }
 0x422   :  { %1220 = vmatprep.subr.mxu0 %v83_v61 }
 0x425   :  { %1221 = vmatpush3.msra.mxu0 %v83_v61 }
 0x4db   :  { %v1182_v2 = vpop.f32.mrb[2].mxu0 }
 0x4dc   :  { %v764_v4 = vadd.f32 %v1182_v2, %v1062_v1  ;;  %v758_v5 = vpop.f32.mrb[3].mxu0 }
 0x4dd   :  { %v759_v6 = vadd.f32 %v1062_v1, %v758_v5 }
 0x4de   :  { %v768_v7 = vadd.f32 %v764_v4, %v1473_v8 }
 0x4df   :  { %v767_v9 = vadd.f32 %v759_v6, %v1468_v3  ;;  %v66_v3 = vld [vmem:[#allocation7 + $0x60] sm:$0xff]  ;;  %v1072_v6 = vld [vmem:[#allocation7 + $0xf5] ss:$0 sm:$0xff] }
 0x4e0   :  { %v772_v10 = vsel %vm100_vm0, %v768_v7, 0.0  ;;  %v1241_v22 = vpack.c.bf16 %v67_v21, %v66_v3 }
 0x4e1   :  { %773 = vadd.xlane.f32.xlu1 %v772_v10  ;;  %v769_v11 = vsel %vm100_vm0, %v767_v9, 0.0 }
 0x4e2   :  { %770 = vadd.xlane.f32.xlu0 %v769_v11  ;;  %1242 = vmatprep.subr.bf16.mxu1 %v1241_v22 }
 0x4e3   :  { %1244 = vmatpush3.bf16.msra.mxu1 %v1241_v22 }
 0x4e4   :  { %1187 = vmatprep.subr.msk.mxu1 %vm107_vm1, %v68_v23 }
 0x4e7   :  { %1188 = vmatpush3.msk.msra.mxu1 %vm107_vm1, %v68_v23 }
 0x56e   :  { %v774_v12 = vpop.xlane.xlu1 %773 }
 0x56f   :  { %v777_v13 = vmul.f32 0.05, %v774_v12  ;;  %v771_v14 = vpop.xlane.xlu0 %770 }
 0x570   :  { %v776_v15 = vmul.f32 0.05, %v771_v14 }
 0x571   :  { %v779_v16 = vsub.f32 %v768_v7, %v777_v13 }
 0x572   :  { %v778_v17 = vsub.f32 %v767_v9, %v776_v15 }
 0x573   :  { %v781_v18 = vmul.f32 %v779_v16, %v779_v16 }
 0x574   :  { %v780_v19 = vmul.f32 %v778_v17, %v778_v17 }
 0x575   :  { %v785_v20 = vsel %vm100_vm0, %v781_v18, 0.0 }
 0x576   :  { %786 = vadd.xlane.f32.xlu1 %v785_v20  ;;  %v782_v8 = vsel %vm100_vm0, %v780_v19, 0.0 }
 0x577   :  { %783 = vadd.xlane.f32.xlu0 %v782_v8 }
 0x603   :  { %v787_v42 = vpop.xlane.xlu1 %786 }
 0x604   :  { %v789_v43 = vmul.f32 0.05, %v787_v42  ;;  %v784_v44 = vpop.xlane.xlu0 %783 }
 0x605   :  { %v788_v45 = vmul.f32 0.05, %v784_v44 }
 0x606   :  { %v791_v46 = vadd.f32 1e-05, %v789_v43 }
 0x607   :  { %v790_v47 = vadd.f32 1e-05, %v788_v45 }
 0x608   :  { %1289 = vrsqrt.f32 %v791_v46 }
 0x609   :  { %1291 = vrsqrt.f32 %v790_v47 }
 0x612   :  { %v1290_v48 = vpop.eup %1289 }
 0x613   :  { %v1292_v50 = vpop.eup %1291  ;;  %v795_v51 = vmul.f32 %v1290_v48, %v779_v16 }
 0x614   :  { %v794_v52 = vmul.f32 %v1292_v50, %v778_v17 }
 0x615   :  { %v801_v54 = vmul.f32 %v1066_v49, %v795_v51 }
 0x616   :  { %v800_v55 = vmul.f32 %v1066_v49, %v794_v52 }
 0x617   :  { %v807_v57 = vadd.f32 %v1067_v53, %v801_v54 }
 0x618   :  { %v806_v56 = vadd.f32 %v1067_v53, %v800_v55 }
 0x61a   :  { %1189 = vmatprep.mubr.msk.f32.mxu1 %vm100_vm0, %v806_v56 }
 0x61b   :  { %1190 = vmatmul.mubr.msk.f32.vlgmr.msra.gmra.mrb[12].mxu1 %vm100_vm0, %v807_v57 }
 0x6ee   :  { %v1191_v63 = vpop.f32.mrb[12].mxu1 }
 0x6ef   :  { %v893_v0 = vadd.f32 %v1191_v63, %v1068_v62  ;;  %v887_v1 = vpop.f32.mrb[13].mxu1 }
 0x6f0   :  { %v888_v2 = vadd.f32 %v1068_v62, %v887_v1 }
 0x6f1   :  { %v897_v5 = vmax.f32 %v893_v0, 0.0 }
 0x6f2   :  { %v896_v4 = vmax.f32 %v888_v2, 0.0 }
 0x6f4   :  { %1222 = vmatprep.mubr.msk.f32.mxu0 %vm902_vm5, %v896_v4 }
 0x6f5   :  { %1223 = vmatmul.mubr.msk.f32.vlgmr.msra.gmra.mrb[4].mxu0 %vm902_vm5, %v897_v5 }
 0x7c8   :  { %v1224_v7 = vpop.f32.mrb[4].mxu0 }
 0x7c9   :  { %v981_v9 = vadd.f32 %v1224_v7, %v1072_v6  ;;  %v975_v10 = vpop.f32.mrb[5].mxu0 }
 0x7ca   :  { %v976_v11 = vadd.f32 %v1072_v6, %v975_v10 }
 0x7cb   :  { %v985_v12 = vadd.f32 %v981_v9, %v807_v57 }
 0x7cc   :  { %v984_v13 = vadd.f32 %v976_v11, %v806_v56 }
 0x7cd   :  { %v989_v14 = vsel %vm100_vm0, %v985_v12, 0.0 }
 0x7ce   :  { %990 = vadd.xlane.f32.xlu1 %v989_v14  ;;  %v986_v15 = vsel %vm100_vm0, %v984_v13, 0.0 }
 0x7cf   :  { %987 = vadd.xlane.f32.xlu0 %v986_v15 }
 0x85b   :  { %v991_v16 = vpop.xlane.xlu1 %990 }
 0x85c   :  { %v993_v17 = vmul.f32 0.05, %v991_v16  ;;  %v988_v18 = vpop.xlane.xlu0 %987 }
 0x85d   :  { %v992_v19 = vmul.f32 0.05, %v988_v18 }
 0x85e   :  { %v995_v20 = vsub.f32 %v985_v12, %v993_v17 }
 0x85f   :  { %v994_v8 = vsub.f32 %v984_v13, %v992_v19 }
 0x860   :  { %v997_v3 = vmul.f32 %v995_v20, %v995_v20 }
 0x861   :  { %v996_v21 = vmul.f32 %v994_v8, %v994_v8 }
 0x862   :  { %v1001_v22 = vsel %vm100_vm0, %v997_v3, 0.0 }
 0x863   :  { %1002 = vadd.xlane.f32.xlu1 %v1001_v22  ;;  %v998_v23 = vsel %vm100_vm0, %v996_v21, 0.0 }
 0x864   :  { %999 = vadd.xlane.f32.xlu0 %v998_v23 }
 0x8f0   :  { %v1003_v24 = vpop.xlane.xlu1 %1002 }
 0x8f1   :  { %v1005_v25 = vmul.f32 0.05, %v1003_v24  ;;  %v1000_v26 = vpop.xlane.xlu0 %999 }
 0x8f2   :  { %v1004_v27 = vmul.f32 0.05, %v1000_v26 }
 0x8f3   :  { %v1007_v28 = vadd.f32 1e-05, %v1005_v25 }
 0x8f4   :  { %v1006_v29 = vadd.f32 1e-05, %v1004_v27 }
 0x8f5   :  { %1293 = vrsqrt.f32 %v1007_v28 }
 0x8f6   :  { %1295 = vrsqrt.f32 %v1006_v29 }
 0x8ff   :  { %v1294_v30 = vpop.eup %1293 }
 0x900   :  { %v1296_v32 = vpop.eup %1295  ;;  %v1011_v33 = vmul.f32 %v1294_v30, %v995_v20 }
 0x901   :  { %v1010_v34 = vmul.f32 %v1296_v32, %v994_v8 }
 0x902   :  { %v1017_v36 = vmul.f32 %v1075_v31, %v1011_v33 }
 0x903   :  { %v1016_v37 = vmul.f32 %v1075_v31, %v1010_v34 }
 0x904   :  { %v1023_v38 = vadd.f32 %v1076_v35, %v1017_v36 }
 0x905   :  { %v1022_v39 = vadd.f32 %v1076_v35, %v1016_v37 }
 0x906   :  { %1025 = vst.msk [vmem:[#allocation8 + $0x8] sm:$0xff] %vm100_vm0, %v1023_v38 }
 0x907   :  { %1024 = vst.msk [vmem:[#allocation8] sm:$0xff] %vm100_vm0, %v1022_v39 }
 0x908   :  { %1374 = shalt.err (!%p1371_p0)
}
 0x909   :  { %s1375_s25 = scalar_lea.hbm %s1542_s3, 256 }
 0x90a   :  { %p1376_p1 = scmp.ne.s32.totalorder %s1542_s3, %s1375_s25  ;;  %p1379_p2 = scmp.lt.u32.totalorder %s1375_s25, %s1542_s3 }
 0x90c   :  { %p1381_p3 = pnand %p1379_p2, %p1376_p1 }
 0x90e   :  { %1384 = shalt.err (!%p1381_p3)
}
 0x90f   :  { %1037 = dma.vmem_to_hbm [thread:$0]  %s1032_s21, 256, %s1542_s3, [#allocation4], %s1393_s1, %s1393_s1, %s1394_s7  }
 0x910   :  { %1389 = dma.done.wait [#allocation4], 256  }
 0x911   :  { %1390 = vsyncadd [#allocation4], 4294967040 }
 0x912   :  { %1041 = vsyncpa [#allocation3], 1 }
 0x913   :  { %1042 = vsyncpa [#allocation6], 1 }
 0x914   :  { %1043 = vsyncpa [#allocation4], 1 }

</bundles_post_ra>
